<compile_context>
chip_gen: v7x
topology: tpu7x:2x2x1
jax: 0.10.0
libtpu: 0.0.40
codegen_flags: <defaults>
</compile_context>

<pallas_src>
import functools
import math

import jax
import jax.numpy as jnp
from jax import lax
from jax.experimental import pallas as pl
from jax.experimental.pallas import tpu as pltpu

_OUT_PAD = 128  # lane-dense output slab width


def _gelu_exact(x):
    # Exact GELU (erf form), same as torch.nn.GELU() default.
    return 0.5 * x * (1.0 + lax.erf(x * (1.0 / math.sqrt(2.0))))


def _complexity_kernel(
    hs_ref,                 # [TILE_B, TILE_S, H]  (streamed)
    wA_ref, bA_ref,         # [H, H//2 + H], [1, H//2 + H]   (fused L1 || F1)
    w2_ref, b2_ref,         # [H//2, H//4], [1, H//4]
    w3r_ref, b3_ref,        # [1, H//4], [1, 1]              (logit head, VPU)
    fw2p_ref, fb2p_ref,     # [H, 128], [1, 128]             (padded F2 head)
    out_ref,                # [TILE_B, 128]  lane-dense slab
    acc_ref,                # VMEM scratch [TILE_B, H] f32 (sequence-sum)
    *, S, TILE_S, H2,
):
    s_idx = pl.program_id(1)
    n_s = pl.num_programs(1)

    @pl.when(s_idx == 0)
    def _init():
        acc_ref[...] = jnp.zeros_like(acc_ref)

    # Running sequence-sum on the incoming tile (f32 accumulation).
    tile = hs_ref[...].astype(jnp.float32)            # [TILE_B, TILE_S, H]
    if S % TILE_S != 0:
        # Mask out-of-range sequence rows in the (partial) last tile.
        seq_idx = s_idx * TILE_S + lax.broadcasted_iota(jnp.int32, tile.shape, 1)
        tile = jnp.where(seq_idx < S, tile, 0.0)
    acc_ref[...] += jnp.sum(tile, axis=1)              # [TILE_B, H]

    @pl.when(s_idx == n_s - 1)
    def _finalize():
        pooled = acc_ref[...] * jnp.float32(1.0 / S)   # mean over seq, [TILE_B, H]

        # Fused (complexity L1 || features F1): one MXU pass over shared LHS.
        hA = _gelu_exact(
            jnp.dot(pooled, wA_ref[...], preferred_element_type=jnp.float32)
            + bA_ref[...]
        )
        h1 = hA[:, :H2]                                # complexity branch
        f1 = hA[:, H2:]                                # features branch

        # complexity_net tail: Linear -> GELU -> (N=1 dot on the VPU) -> Sigmoid
        h2 = _gelu_exact(
            jnp.dot(h1, w2_ref[...], preferred_element_type=jnp.float32)
            + b2_ref[...]
        )
        logits = (
            jnp.sum(h2 * w3r_ref[...], axis=-1, keepdims=True) + b3_ref[...]
        )                                              # [TILE_B, 1]
        comp = jax.nn.sigmoid(logits)

        # features tail: padded [H, 128] weight -> lane-dense slab; column 0
        # carries the sigmoid score, columns 1..5 the features.
        slab = (
            jnp.dot(f1, fw2p_ref[...], preferred_element_type=jnp.float32)
            + fb2p_ref[...]
        )                                              # [TILE_B, 128]
        lane = lax.broadcasted_iota(jnp.int32, slab.shape, 1)
        slab = jnp.where(lane == 0, comp, slab)
        out_ref[...] = slab.astype(out_ref.dtype)


def _choose_tile_s(tile_b, S, H, elem_bytes, target_bytes=4 * 1024 * 1024):
    """Largest seq tile whose [tile_b, TILE_S, H] block stays under ~4 MiB,
    either == S or a multiple of 8 (sublane constraint)."""
    if tile_b * S * H * elem_bytes <= target_bytes:
        return S
    t = target_bytes // (tile_b * H * elem_bytes)
    t = max(8, (t // 8) * 8)
    return min(t, max(8, (S // 8) * 8))


def complexity_estimator_forward(hidden_states, params):
    """hidden_states: [B, S, H] (f32 or bf16). params: dict of weights/biases
    (weights stored as [in, out], biases as [1, out])."""
    B, S, H = hidden_states.shape
    H2, H4 = H // 2, H // 4
    elem_bytes = hidden_states.dtype.itemsize

    # ---- host-side weight fusion / padding (tiny, done per call) -----------
    wA = jnp.concatenate([params["w1"], params["fw1"]], axis=1)      # [H, H2+H]
    bA = jnp.concatenate([params["b1"], params["fb1"]], axis=1)      # [1, H2+H]
    w3_row = jnp.reshape(params["w3"], (1, H4))                      # [1, H4]
    fw2_pad = jnp.zeros((H, _OUT_PAD), jnp.float32).at[:, 1:6].set(params["fw2"])
    fb2_pad = jnp.zeros((1, _OUT_PAD), jnp.float32).at[:, 1:6].set(params["fb2"])
    # NOTE: for very large H (e.g. 4096+), the fused [H, H2+H] weight should be
    # tiled along its output (N) dimension or stored in bf16 to stay inside
    # v7x's 64 MiB VMEM; not needed at these sizes.

    # ---- tiling -------------------------------------------------------------
    TILE_B = B if B <= 8 else 8
    grid_b = pl.cdiv(B, TILE_B)
    TILE_S = _choose_tile_s(TILE_B, S, H, elem_bytes)
    grid_s = pl.cdiv(S, TILE_S)

    # ---- VMEM budget / cost estimate ---------------------------------------
    weight_bytes = int(
        (wA.size + bA.size + params["w2"].size + params["b2"].size
         + w3_row.size + params["b3"].size + fw2_pad.size + fb2_pad.size) * 4
    )
    in_tile_bytes = TILE_B * TILE_S * H * elem_bytes
    out_tile_bytes = TILE_B * _OUT_PAD * 4
    scratch_bytes = TILE_B * H * 4
    needed = 2 * in_tile_bytes + weight_bytes + 2 * out_tile_bytes + scratch_bytes
    vmem_limit = int(min(max(2 * needed, 32 * 1024 * 1024), 64 * 1024 * 1024))

    flops = int(
        B * S * H                       # sequence-sum accumulation
        + 2 * B * H * (H2 + H)          # fused pooled matmul
        + 2 * B * H2 * H4               # complexity L2
        + 2 * B * H4                    # VPU logit dot
        + 2 * B * H * _OUT_PAD          # padded feature matmul
    )
    transcendentals = int(B * (H2 + H + H4 + 1))
    bytes_accessed = int(
        B * S * H * elem_bytes + weight_bytes + B * _OUT_PAD * 4
    )

    kernel = functools.partial(_complexity_kernel, S=S, TILE_S=TILE_S, H2=H2)

    def _const_spec(arr):
        return pl.BlockSpec(arr.shape, lambda b, s: (0, 0))

    weights = (wA, bA, params["w2"], params["b2"], w3_row, params["b3"],
               fw2_pad, fb2_pad)

    out = pl.pallas_call(
        kernel,
        out_shape=jax.ShapeDtypeStruct((B, _OUT_PAD), jnp.float32),
        grid_spec=pltpu.PrefetchScalarGridSpec(
            num_scalar_prefetch=0,
            grid=(grid_b, grid_s),
            in_specs=[
                pl.BlockSpec((TILE_B, TILE_S, H), lambda b, s: (b, s, 0)),
            ] + [_const_spec(w) for w in weights],
            out_specs=pl.BlockSpec((TILE_B, _OUT_PAD), lambda b, s: (b, 0)),
            scratch_shapes=[pltpu.VMEM((TILE_B, H), jnp.float32)],
        ),
        compiler_params=pltpu.CompilerParams(
            dimension_semantics=("parallel", "arbitrary"),
            vmem_limit_bytes=vmem_limit,
        ),
        cost_estimate=pl.CostEstimate(
            flops=flops,
            transcendentals=transcendentals,
            bytes_accessed=bytes_accessed,
        ),
    )(hidden_states, *weights)

    complexity = out[:, 0:1]
    features = out[:, 1:6]
    return complexity, features


def init_params(hidden_size, key):
    """Deterministic PyTorch-Linear-style init; weights stored as [in, out]."""
    h = hidden_size
    h2 = h // 2
    h4 = h // 4

    def linear(key, fan_in, fan_out):
        kw, kb = jax.random.split(key)
        bound = 1.0 / math.sqrt(fan_in)
        w = jax.random.uniform(kw, (fan_in, fan_out), jnp.float32, -bound, bound)
        b = jax.random.uniform(kb, (1, fan_out), jnp.float32, -bound, bound)
        return w, b

    keys = jax.random.split(key, 5)
    w1, b1 = linear(keys[0], h, h2)
    w2, b2 = linear(keys[1], h2, h4)
    w3, b3 = linear(keys[2], h4, 1)
    fw1, fb1 = linear(keys[3], h, h)
    fw2, fb2 = linear(keys[4], h, 5)
    return dict(
        w1=w1, b1=b1, w2=w2, b2=b2, w3=w3, b3=b3,
        fw1=fw1, fb1=fb1, fw2=fw2, fb2=fb2,
    )


def reference_forward(hidden_states, params):
    """Pure-JAX reference for sanity checking."""
    pooled = jnp.mean(hidden_states.astype(jnp.float32), axis=1)
    h1 = _gelu_exact(pooled @ params["w1"] + params["b1"])
    h2 = _gelu_exact(h1 @ params["w2"] + params["b2"])
    complexity = jax.nn.sigmoid(h2 @ params["w3"] + params["b3"])
    f1 = _gelu_exact(pooled @ params["fw1"] + params["fb1"])
    features = f1 @ params["fw2"] + params["fb2"]
    return complexity, features


if __name__ == "__main__":
    B, S, H = 2, 8, 32  # batch, seq_len, hidden_size

    key = jax.random.PRNGKey(0)
    k_x, k_p = jax.random.split(key)
    hidden_states = jax.random.normal(k_x, (B, S, H), dtype=jnp.float32)
    params = init_params(H, k_p)

    complexity, features = complexity_estimator_forward(hidden_states, params)
    jax.block_until_ready((complexity, features))

    # correctness check against pure-JAX reference
    ref_c, ref_f = reference_forward(hidden_states, params)
    assert complexity.shape == (B, 1) and features.shape == (B, 5)
    assert jnp.allclose(complexity, ref_c, atol=1e-5, rtol=1e-5)
    assert jnp.allclose(features, ref_f, atol=1e-5, rtol=1e-5)

    print("KERNEL_OK")
</pallas_src>

<mosaic_0001>
module attributes {stable_mosaic.version = 11 : i64} {
  func.func @_complexity_kernel(%arg0: i32, %arg1: i32, %arg2: memref<2x8x32xf32, #tpu.memory_space<vmem>>, %arg3: memref<32x48xf32, #tpu.memory_space<vmem>>, %arg4: memref<1x48xf32, #tpu.memory_space<vmem>>, %arg5: memref<16x8xf32, #tpu.memory_space<vmem>>, %arg6: memref<1x8xf32, #tpu.memory_space<vmem>>, %arg7: memref<1x8xf32, #tpu.memory_space<vmem>>, %arg8: memref<1x1xf32, #tpu.memory_space<vmem>>, %arg9: memref<32x128xf32, #tpu.memory_space<vmem>>, %arg10: memref<1x128xf32, #tpu.memory_space<vmem>>, %arg11: memref<2x128xf32, #tpu.memory_space<vmem>>, %arg12: memref<2x32xf32, #tpu.memory_space<vmem>>) attributes {dimension_semantics = [#tpu.dimension_semantics<parallel>, #tpu.dimension_semantics<arbitrary>], iteration_bounds = array<i64: 1, 1>, scalar_prefetch = 0 : i64, scratch_operands = 1 : i64, tpu.core_type = #tpu.core_type<tc>, window_params = [{transform_indices = @transform_0, window_bounds = array<i64: 2, 8, 32>}, {pipeline_mode = #tpu.pipeline_mode<synchronous>, transform_indices = @transform_1, window_bounds = array<i64: 32, 48>}, {pipeline_mode = #tpu.pipeline_mode<synchronous>, transform_indices = @transform_2, window_bounds = array<i64: 1, 48>}, {pipeline_mode = #tpu.pipeline_mode<synchronous>, transform_indices = @transform_3, window_bounds = array<i64: 16, 8>}, {pipeline_mode = #tpu.pipeline_mode<synchronous>, transform_indices = @transform_4, window_bounds = array<i64: 1, 8>}, {pipeline_mode = #tpu.pipeline_mode<synchronous>, transform_indices = @transform_5, window_bounds = array<i64: 1, 8>}, {pipeline_mode = #tpu.pipeline_mode<synchronous>, transform_indices = @transform_6, window_bounds = array<i64: 1, 1>}, {pipeline_mode = #tpu.pipeline_mode<synchronous>, transform_indices = @transform_7, window_bounds = array<i64: 32, 128>}, {pipeline_mode = #tpu.pipeline_mode<synchronous>, transform_indices = @transform_8, window_bounds = array<i64: 1, 128>}, {transform_indices = @transform_9, window_bounds = array<i64: 2, 128>}]} {
    %c0_i32 = arith.constant 0 : i32
    %0 = arith.cmpi eq, %arg1, %c0_i32 : i32
    %1 = arith.extui %0 : i1 to i32
    %c0_i32_0 = arith.constant 0 : i32
    %2 = arith.cmpi ne, %1, %c0_i32_0 : i32
    scf.if %2 {
      %cst_9 = arith.constant 0.000000e+00 : f32
      %11 = vector.broadcast %cst_9 : f32 to vector<2x32xf32>
      %c0_10 = arith.constant 0 : index
      %c0_11 = arith.constant 0 : index
      %12 = vector.load %arg12[%c0_10, %c0_11] : memref<2x32xf32, #tpu.memory_space<vmem>>, vector<2x32xf32>
      tpu.vector_store %arg12[%c0_10, %c0_11], %11 {strides = array<i32>} : memref<2x32xf32, #tpu.memory_space<vmem>>, vector<2x32xf32>,
    } else {
    }
    %c0 = arith.constant 0 : index
    %c0_1 = arith.constant 0 : index
    %c0_2 = arith.constant 0 : index
    %3 = vector.load %arg2[%c0, %c0_1, %c0_2] : memref<2x8x32xf32, #tpu.memory_space<vmem>>, vector<2x8x32xf32>
    %c0_3 = arith.constant 0 : index
    %c0_4 = arith.constant 0 : index
    %4 = vector.load %arg12[%c0_3, %c0_4] : memref<2x32xf32, #tpu.memory_space<vmem>>, vector<2x32xf32>
    %cst = arith.constant dense<0.000000e+00> : vector<2x32xf32>
    %5 = vector.multi_reduction <add>, %3, %cst [1] : vector<2x8x32xf32> to vector<2x32xf32>
    %6 = arith.addf %4, %5 : vector<2x32xf32>
    %c0_5 = arith.constant 0 : index
    %c0_6 = arith.constant 0 : index
    %7 = vector.load %arg12[%c0_5, %c0_6] : memref<2x32xf32, #tpu.memory_space<vmem>>, vector<2x32xf32>
    tpu.vector_store %arg12[%c0_5, %c0_6], %6 {strides = array<i32>} : memref<2x32xf32, #tpu.memory_space<vmem>>, vector<2x32xf32>,
    %c0_i32_7 = arith.constant 0 : i32
    %8 = arith.cmpi eq, %arg1, %c0_i32_7 : i32
    %9 = arith.extui %8 : i1 to i32
    %c0_i32_8 = arith.constant 0 : i32
    %10 = arith.cmpi ne, %9, %c0_i32_8 : i32
    scf.if %10 {
      %c0_9 = arith.constant 0 : index
      %c0_10 = arith.constant 0 : index
      %11 = vector.load %arg12[%c0_9, %c0_10] : memref<2x32xf32, #tpu.memory_space<vmem>>, vector<2x32xf32>
      %cst_11 = arith.constant 1.250000e-01 : f32
      %12 = vector.broadcast %cst_11 : f32 to vector<2x32xf32>
      %13 = arith.mulf %11, %12 : vector<2x32xf32>
      %c0_12 = arith.constant 0 : index
      %c0_13 = arith.constant 0 : index
      %14 = vector.load %arg3[%c0_12, %c0_13] : memref<32x48xf32, #tpu.memory_space<vmem>>, vector<32x48xf32>
      %cst_14 = arith.constant dense<0.000000e+00> : vector<2x48xf32>
      %15 = tpu.matmul %13, %14, %cst_14 {dimension_numbers = #tpu.dot_dimension_numbers<[1], [0], [0], [1], [0, 0, 1, 1], [], []>} : vector<2x32xf32>, vector<32x48xf32>, vector<2x48xf32> -> vector<2x48xf32>
      %c0_15 = arith.constant 0 : index
      %c0_16 = arith.constant 0 : index
      %16 = vector.load %arg4[%c0_15, %c0_16] : memref<1x48xf32, #tpu.memory_space<vmem>>, vector<1x48xf32>
      %17 = vector.broadcast %16 : vector<1x48xf32> to vector<2x48xf32>
      %18 = arith.addf %15, %17 : vector<2x48xf32>
      %cst_17 = arith.constant 5.000000e-01 : f32
      %19 = vector.broadcast %cst_17 : f32 to vector<2x48xf32>
      %20 = arith.mulf %19, %18 : vector<2x48xf32>
      %cst_18 = arith.constant 0.707106769 : f32
      %21 = vector.broadcast %cst_18 : f32 to vector<2x48xf32>
      %22 = arith.mulf %18, %21 : vector<2x48xf32>
      %23 = math.erf %22 : vector<2x48xf32>
      %cst_19 = arith.constant 1.000000e+00 : f32
      %24 = vector.broadcast %cst_19 : f32 to vector<2x48xf32>
      %25 = arith.addf %24, %23 : vector<2x48xf32>
      %26 = arith.mulf %20, %25 : vector<2x48xf32>
      %27 = vector.extract_strided_slice %26 {offsets = [0, 0], sizes = [2, 16], strides = [1, 1]} : vector<2x48xf32> to vector<2x16xf32>
      %28 = vector.extract_strided_slice %26 {offsets = [0, 16], sizes = [2, 32], strides = [1, 1]} : vector<2x48xf32> to vector<2x32xf32>
      %c0_20 = arith.constant 0 : index
      %c0_21 = arith.constant 0 : index
      %29 = vector.load %arg5[%c0_20, %c0_21] : memref<16x8xf32, #tpu.memory_space<vmem>>, vector<16x8xf32>
      %cst_22 = arith.constant dense<0.000000e+00> : vector<2x8xf32>
      %30 = tpu.matmul %27, %29, %cst_22 {dimension_numbers = #tpu.dot_dimension_numbers<[1], [0], [0], [1], [0, 0, 1, 1], [], []>} : vector<2x16xf32>, vector<16x8xf32>, vector<2x8xf32> -> vector<2x8xf32>
      %c0_23 = arith.constant 0 : index
      %c0_24 = arith.constant 0 : index
      %31 = vector.load %arg6[%c0_23, %c0_24] : memref<1x8xf32, #tpu.memory_space<vmem>>, vector<1x8xf32>
      %32 = vector.broadcast %31 : vector<1x8xf32> to vector<2x8xf32>
      %33 = arith.addf %30, %32 : vector<2x8xf32>
      %cst_25 = arith.constant 5.000000e-01 : f32
      %34 = vector.broadcast %cst_25 : f32 to vector<2x8xf32>
      %35 = arith.mulf %34, %33 : vector<2x8xf32>
      %cst_26 = arith.constant 0.707106769 : f32
      %36 = vector.broadcast %cst_26 : f32 to vector<2x8xf32>
      %37 = arith.mulf %33, %36 : vector<2x8xf32>
      %38 = math.erf %37 : vector<2x8xf32>
      %cst_27 = arith.constant 1.000000e+00 : f32
      %39 = vector.broadcast %cst_27 : f32 to vector<2x8xf32>
      %40 = arith.addf %39, %38 : vector<2x8xf32>
      %41 = arith.mulf %35, %40 : vector<2x8xf32>
      %c0_28 = arith.constant 0 : index
      %c0_29 = arith.constant 0 : index
      %42 = vector.load %arg7[%c0_28, %c0_29] : memref<1x8xf32, #tpu.memory_space<vmem>>, vector<1x8xf32>
      %43 = vector.broadcast %42 : vector<1x8xf32> to vector<2x8xf32>
      %44 = arith.mulf %41, %43 : vector<2x8xf32>
      %cst_30 = arith.constant dense<0.000000e+00> : vector<2xf32>
      %45 = vector.multi_reduction <add>, %44, %cst_30 [1] : vector<2x8xf32> to vector<2xf32>
      %46 = vector.shape_cast %45 : vector<2xf32> to vector<2x1xf32>
      %c0_31 = arith.constant 0 : index
      %c0_32 = arith.constant 0 : index
      %47 = vector.load %arg8[%c0_31, %c0_32] : memref<1x1xf32, #tpu.memory_space<vmem>>, vector<1x1xf32>
      %48 = vector.broadcast %47 : vector<1x1xf32> to vector<2x1xf32>
      %49 = arith.addf %46, %48 : vector<2x1xf32>
      %50 = arith.negf %49 : vector<2x1xf32>
      %51 = math.exp %50 : vector<2x1xf32>
      %cst_33 = arith.constant 1.000000e+00 : f32
      %52 = vector.broadcast %cst_33 : f32 to vector<2x1xf32>
      %53 = arith.addf %52, %51 : vector<2x1xf32>
      %54 = arith.divf %52, %53 : vector<2x1xf32>
      %c0_34 = arith.constant 0 : index
      %c0_35 = arith.constant 0 : index
      %55 = vector.load %arg9[%c0_34, %c0_35] : memref<32x128xf32, #tpu.memory_space<vmem>>, vector<32x128xf32>
      %cst_36 = arith.constant dense<0.000000e+00> : vector<2x128xf32>
      %56 = tpu.matmul %28, %55, %cst_36 {dimension_numbers = #tpu.dot_dimension_numbers<[1], [0], [0], [1], [0, 0, 1, 1], [], []>} : vector<2x32xf32>, vector<32x128xf32>, vector<2x128xf32> -> vector<2x128xf32>
      %c0_37 = arith.constant 0 : index
      %c0_38 = arith.constant 0 : index
      %57 = vector.load %arg10[%c0_37, %c0_38] : memref<1x128xf32, #tpu.memory_space<vmem>>, vector<1x128xf32>
      %58 = vector.broadcast %57 : vector<1x128xf32> to vector<2x128xf32>
      %59 = arith.addf %56, %58 : vector<2x128xf32>
      %60 = tpu.iota {dimensions = array<i32: 1>} : vector<2x128xi32>
      %c0_i32_39 = arith.constant 0 : i32
      %61 = vector.broadcast %c0_i32_39 : i32 to vector<2x128xi32>
      %62 = arith.cmpi eq, %60, %61 : vector<2x128xi32>
      %63 = vector.shape_cast %54 : vector<2x1xf32> to vector<2x1xf32>
      %64 = vector.broadcast %63 : vector<2x1xf32> to vector<2x128xf32>
      %65 = arith.select %62, %64, %59 : vector<2x128xi1>, vector<2x128xf32>
      %c0_40 = arith.constant 0 : index
      %c0_41 = arith.constant 0 : index
      %66 = vector.load %arg11[%c0_40, %c0_41] : memref<2x128xf32, #tpu.memory_space<vmem>>, vector<2x128xf32>
      tpu.vector_store %arg11[%c0_40, %c0_41], %65 {strides = array<i32>} : memref<2x128xf32, #tpu.memory_space<vmem>>, vector<2x128xf32>,
    } else {
    }
    return
  }
  func.func @transform_0(%arg0: i32, %arg1: i32) -> (i32, i32, i32) {
    %c0_i32 = arith.constant 0 : i32
    %c0_i32_0 = arith.constant 0 : i32
    return %arg0, %arg1, %c0_i32 : i32, i32, i32
  }
  func.func @transform_1(%arg0: i32, %arg1: i32) -> (i32, i32) {
    %c0_i32 = arith.constant 0 : i32
    %c0_i32_0 = arith.constant 0 : i32
    %c0_i32_1 = arith.constant 0 : i32
    return %c0_i32, %c0_i32_0 : i32, i32
  }
  func.func @transform_2(%arg0: i32, %arg1: i32) -> (i32, i32) {
    %c0_i32 = arith.constant 0 : i32
    %c0_i32_0 = arith.constant 0 : i32
    %c0_i32_1 = arith.constant 0 : i32
    return %c0_i32, %c0_i32_0 : i32, i32
  }
  func.func @transform_3(%arg0: i32, %arg1: i32) -> (i32, i32) {
    %c0_i32 = arith.constant 0 : i32
    %c0_i32_0 = arith.constant 0 : i32
    %c0_i32_1 = arith.constant 0 : i32
    return %c0_i32, %c0_i32_0 : i32, i32
  }
  func.func @transform_4(%arg0: i32, %arg1: i32) -> (i32, i32) {
    %c0_i32 = arith.constant 0 : i32
    %c0_i32_0 = arith.constant 0 : i32
    %c0_i32_1 = arith.constant 0 : i32
    return %c0_i32, %c0_i32_0 : i32, i32
  }
  func.func @transform_5(%arg0: i32, %arg1: i32) -> (i32, i32) {
    %c0_i32 = arith.constant 0 : i32
    %c0_i32_0 = arith.constant 0 : i32
    %c0_i32_1 = arith.constant 0 : i32
    return %c0_i32, %c0_i32_0 : i32, i32
  }
  func.func @transform_6(%arg0: i32, %arg1: i32) -> (i32, i32) {
    %c0_i32 = arith.constant 0 : i32
    %c0_i32_0 = arith.constant 0 : i32
    %c0_i32_1 = arith.constant 0 : i32
    return %c0_i32, %c0_i32_0 : i32, i32
  }
  func.func @transform_7(%arg0: i32, %arg1: i32) -> (i32, i32) {
    %c0_i32 = arith.constant 0 : i32
    %c0_i32_0 = arith.constant 0 : i32
    %c0_i32_1 = arith.constant 0 : i32
    return %c0_i32, %c0_i32_0 : i32, i32
  }
  func.func @transform_8(%arg0: i32, %arg1: i32) -> (i32, i32) {
    %c0_i32 = arith.constant 0 : i32
    %c0_i32_0 = arith.constant 0 : i32
    %c0_i32_1 = arith.constant 0 : i32
    return %c0_i32, %c0_i32_0 : i32, i32
  }
  func.func @transform_9(%arg0: i32, %arg1: i32) -> (i32, i32) {
    %c0_i32 = arith.constant 0 : i32
    %c0_i32_0 = arith.constant 0 : i32
    return %arg0, %c0_i32 : i32, i32
  }
}

</mosaic_0001>

<bundles_post_ra>
// kernel: tpu_custom_call.1
= control target key start
LH: loop header
LB: loop body
LE: loop exit
PB: predicated region body
PF: predicated region fallthrough
CT: control target
= control target key end

     0   :  { %s720_s0 = inlined_call_operand.vmem [shape: f32[2,8,32], index: 0, kind: input, shape index: {}]   ;;  %s721_s1 = inlined_call_operand.hbm [shape: f32[32,48], index: 1, kind: input, shape index: {}]   ;;  %s722_s2 = inlined_call_operand.vmem [shape: f32[1,48], index: 2, kind: input, shape index: {}]   ;;  %s723_s3 = inlined_call_operand.vmem [shape: f32[16,8], index: 3, kind: input, shape index: {}]   ;;  %s724_s4 = inlined_call_operand.vmem [shape: f32[1,8], index: 4, kind: input, shape index: {}]   ;;  %s725_s5 = inlined_call_operand.hbm [shape: f32[1,8], index: 5, kind: input, shape index: {}]   ;;  %s726_s6 = inlined_call_operand.<no memory space> [shape: f32[1,1], index: 6, kind: input, shape index: {}]   ;;  %s727_s7 = inlined_call_operand.vmem [shape: f32[32,128], index: 7, kind: input, shape index: {}]   ;;  %s728_s8 = inlined_call_operand.vmem [shape: f32[1,128], index: 8, kind: input, shape index: {}]   ;;  %s729_s9 = inlined_call_operand.hbm [shape: f32[2,128], index: 9, kind: output, shape index: {}]  }
   0x1   :  { %v14_v0 = vstv %s726_s6 }
   0x2   :  { %15 = vst [vmem:[#allocation3] sm:$0x1] %v14_v0 }
   0x3   :  { %16 = vsyncpa [#allocation5], 0 }
   0x4   :  { %17 = vsyncpa [#allocation8], 0 }
   0x5   :  { %18 = vsyncpa [#allocation6], 0  ;;  %s570_s11 = smov [#allocation4]   ;;  %s498_s15 = scalar_lea.hbm %s721_s1, 512 }
   0x6   :  { %s26_s12 = sshll.u32 %s570_s11, 4  ;;  %p499_p0 = scmp.ne.s32.totalorder %s721_s1, %s498_s15  ;;  %s27_s12 = int_to_ptr.vmem [resolvable:$true] %s26_s12 }
   0x7   :  { %p502_p1 = scmp.lt.u32.totalorder %s498_s15, %s721_s1 }
   0x9   :  { %p504_p2 = pnand %p502_p1, %p499_p0 }
   0xb   :  { %507 = shalt.err (!%p504_p2)
}
   0xc   :  { %s508_s6 = scalar_lea.vmem %s27_s12, 512  ;;  %p513_p4 = scmp.lt.s32.totalorder %s27_s12, %s27_s12 }
   0xd   :  { %p509_p3 = scmp.ne.s32.totalorder %s27_s12, %s508_s6  ;;  %p514_p5 = scmp.lt.s32.totalorder %s508_s6, %s508_s6 }
   0xf   :  { %p515_p6 = por %p514_p5, %p513_p4 }
  0x11   :  { %p516_p7 = pnand %p515_p6, %p509_p3 }
  0x13   :  { %519 = shalt.err (!%p516_p7)
}
  0x14   :  { %s571_s20 = smov 128   ;;  %s572_s21 = smov 8  }
  0x15   :  { %32 = dma.hbm_to_vmem [thread:$0]  %s721_s1, 512, %s27_s12, [#allocation5], %s571_s20, %s571_s20, %s572_s21  }
  0x16   :  { %s573_s24 = smov [#allocation7]   ;;  %s520_s28 = scalar_lea.hbm %s725_s5, 16 }
  0x17   :  { %s45_s25 = sshll.u32 %s573_s24, 4  ;;  %p521_p8 = scmp.ne.s32.totalorder %s725_s5, %s520_s28  ;;  %s46_s25 = int_to_ptr.vmem [resolvable:$true] %s45_s25 }
  0x18   :  { %p524_p9 = scmp.lt.u32.totalorder %s520_s28, %s725_s5 }
  0x1a   :  { %p526_p10 = pnand %p524_p9, %p521_p8 }
  0x1c   :  { %529 = shalt.err (!%p526_p10)
}
  0x1d   :  { %s530_s13 = scalar_lea.vmem %s46_s25, 16  ;;  %s534_s1 = scalar_lea.vmem %s46_s25, 32 }
  0x1e   :  { %p531_p11 = scmp.ne.s32.totalorder %s46_s25, %s530_s13  ;;  %p535_p12 = scmp.lt.s32.totalorder %s46_s25, %s46_s25 }
  0x1f   :  { %p536_p13 = scmp.lt.s32.totalorder %s534_s1, %s530_s13 }
  0x21   :  { %p537_p0 = por %p536_p13, %p535_p12 }
  0x23   :  { %p538_p1 = pnand %p537_p0, %p531_p11 }
  0x25   :  { %541 = shalt.err (!%p538_p1)
}
  0x26   :  { %48 = dma.hbm_to_vmem [thread:$0]  %s725_s5, 16, %s46_s25, [#allocation8]  }
  0x27   :  { %564 = dma.done.wait [#allocation5], 512  }
  0x28   :  { %565 = vsyncadd [#allocation5], 4294966784 }
  0x29   :  { %566 = dma.done.wait [#allocation8], 16  }
  0x2a   :  { %567 = vsyncadd [#allocation8], 4294967280  ;;  %vm65_vm0 = vcmask 254976   ;;  %v574_v1 = vmov 0.0|0.0   ;;  %v575_v2 = vmov 0.0   ;;  %vm576_vm1 = vmmov 0  }
  0x2b   :  { %463 = vmatprep.subr.bf16.mxu0 %v574_v1  ;;  %66 = vst.msk [vmem:[#allocation2] sm:$0x3] %vm65_vm0, %v575_v2  ;;  %442 = vmatprep.mubr.msk.f32.mxu0 %vm576_vm1, %v575_v2  ;;  %vm70_vm2 = vcmask 261120   ;;  %v98_v3 = vld [vmem:[#allocation4] sm:$0xff]  ;;  %v99_v4 = vld [vmem:[#allocation4 + $0x8] sm:$0xff]  ;;  %v100_v5 = vld [vmem:[#allocation4 + $0x10] sm:$0xff] }
  0x2c   :  { %469 = vmatprep.subr.bf16.mxu1 %v574_v1  ;;  %449 = vmatprep.mubr.msk.f32.mxu1 %vm576_vm1, %v575_v2  ;;  %v464_v6 = vpack.c.bf16 %v99_v4, %v98_v3  ;;  %v101_v7 = vld [vmem:[#allocation4 + $0x18] sm:$0xff]  ;;  %v68_v9 = vld [vmem:[%s720_s0 + $0x8] sm:$0xff]  ;;  %vm87_vm3 = vcmask 1041409   ;;  %vm196_vm4 = vcmask 130048   ;;  %v303_v45 = vld [vmem:[%s727_s7 + $0x10] sm:$0xff]  ;;  %s577_s28 = smov 112  }
  0x2d   :  { %v67_v8 = vld [vmem:[%s720_s0] sm:$0xff]  ;;  %v78_v11 = vsel %vm70_vm2, %v68_v9, 0.0  ;;  %v467_v12 = vpack.c.bf16 %v101_v7, %v100_v5  ;;  %v188_v31 = vld [vmem:[%s723_s3 + $0x8] sm:$0xff]  ;;  %v304_v46 = vld [vmem:[%s727_s7 + $0x18] sm:$0xff]  ;;  %vm283_vm5 = vcmask 58368   ;;  %v578_v61 = vmov 0  }
  0x2e   :  { %v71_v10 = vsel %vm70_vm2, %v67_v8, 0.0  ;;  %465 = vmatpush3.bf16.msra.mxu0 %v464_v6  ;;  %v79_v14 = vrot.slane %v78_v11, 4  ;;  %v187_v30 = vld [vmem:[%s723_s3] sm:$0xff]  ;;  %v302_v39 = vld [vmem:[%s727_s7 + $0x8] sm:$0xff]  ;;  %v476_v47 = vpack.c.bf16 %v304_v46, %v303_v45  ;;  %488 = vset.pattern.permute.xlu1 %v578_v61  ;;  %v386_v7 = vlaneseq  ;;  %s579_s10 = smov [#allocation9]  }
  0x2f   :  { %v72_v13 = vrot.slane %v71_v10, 4  ;;  %466 = vmatprep.subr.bf16.mxu0 %v574_v1  ;;  %v470_v32 = vpack.c.bf16 %v188_v31, %v187_v30  ;;  %v412_v33 = vld [vmem:[%s722_s2] ss:$0 sm:$0xff]  ;;  %v416_v57 = vld [vmem:[#allocation7] ss:$0 sm:$0xff]  ;;  %489 = vset.pattern.permute.xlu0 %v578_v61  ;;  %s402_s11 = sshll.u32 %s579_s10, 4  ;;  %s403_s11 = int_to_ptr.vmem [resolvable:$true] %s402_s11 }
  0x30   :  { %v80_v16 = vadd.f32 %v79_v14, %v78_v11  ;;  %v301_v38 = vld [vmem:[%s727_s7] sm:$0xff]  ;;  %v387_v8 = vand.u32 127, %v386_v7  ;;  %s542_s13 = scalar_lea.vmem %s403_s11, 32  ;;  %p547_p3 = scmp.lt.s32.totalorder %s403_s11, %s403_s11 }
  0x31   :  { %v73_v15 = vadd.f32 %v72_v13, %v71_v10  ;;  %471 = vmatpush3.bf16.msra.mxu1 %v470_v32  ;;  %v473_v43 = vpack.c.bf16 %v302_v39, %v301_v38  ;;  %v414_v49 = vld [vmem:[%s724_s4] ss:$0 sm:$0xff]  ;;  %v417_v0 = vld [vmem:[#allocation3] ss:$0 sm:$0xff]  ;;  %p543_p2 = scmp.ne.s32.totalorder %s403_s11, %s542_s13  ;;  %p548_p4 = scmp.lt.s32.totalorder %s542_s13, %s542_s13 }
  0x32   :  { %468 = vmatpush3.bf16.msra.mxu0 %v467_v12  ;;  %v81_v18 = vrot.slane %v80_v16, 2  ;;  %v69_v23 = vld [vmem:[#allocation2] sm:$0x3]  ;;  %472 = vmatprep.subr.bf16.mxu1 %v574_v1  ;;  %vm388_vm6 = vcmp.eq.s32.totalorder %v387_v8, 0 }
  0x33   :  { %v74_v17 = vrot.slane %v73_v15, 2  ;;  %v419_v9 = vld [vmem:[%s728_s8] ss:$0 sm:$0xff]  ;;  %p549_p5 = por %p548_p4, %p547_p3 }
  0x34   :  { %v82_v20 = vadd.f32 %v81_v18, %v80_v16 }
  0x35   :  { %v75_v19 = vadd.f32 %v74_v17, %v73_v15  ;;  %p550_p6 = pnand %p549_p5, %p543_p2 }
  0x36   :  { %v83_v22 = vrot.slane %v82_v20, 1 }
  0x37   :  { %v76_v21 = vrot.slane %v75_v19, 1 }
  0x38   :  { %v84_v25 = vadd.f32 %v83_v22, %v82_v20 }
  0x39   :  { %v77_v24 = vadd.f32 %v76_v21, %v75_v19 }
  0x3b   :  { %v88_v26 = vsel %vm87_vm3, %v84_v25, %v77_v24 }
  0x3c   :  { %v90_v27 = vadd.f32 %v88_v26, %v69_v23 }
  0x3e   :  { %92 = vst.msk [vmem:[#allocation2] sm:$0x3] %vm65_vm0, %v90_v27 }
  0x45   :  { %v96_v28 = vld [vmem:[#allocation2] sm:$0x3] }
  0x46   :  { %v97_v29 = vmul.f32 0.125, %v96_v28 }
  0x48   :  { %443 = vmatmul.mubr.msk.f32.vlgmr.msra.gmra.mrb[0].mxu0 %vm70_vm2, %v97_v29 }
 0x11b   :  { %v178_v34 = vpop.f32.mrb[0].mxu0 }
 0x11c   :  { %v179_v35 = vadd.f32 %v412_v33, %v178_v34  ;;  %v444_v36 = vpop.f32.mrb[1].mxu0 }
 0x11e   :  { %v183_v37 = vmul.f32 0.70710677, %v179_v35  ;;  %v182_v41 = vmul.f32 0.5, %v179_v35 }
 0x120   :  { %490 = verf.f32 %v183_v37 }
 0x12a   :  { %v491_v40 = vpop.eup %490 }
 0x12b   :  { %v185_v42 = vadd.f32 1.0, %v491_v40 }
 0x12d   :  { %v186_v44 = vmul.f32 %v185_v42, %v182_v41 }
 0x12f   :  { %312 = vrot.lane.b32.xlu0 %v186_v44, %s577_s28  ;;  %450 = vmatmul.mubr.msk.f32.vlgmr.msra.gmra.mrb[0].mxu1 %vm196_vm4, %v186_v44 }
 0x130   :  { %474 = vmatpush3.bf16.msra.mxu1 %v473_v43  ;;  %460 = vmatprep.mubr.msk.f32.mxu1 %vm576_vm1, %v575_v2 }
 0x131   :  { %475 = vmatprep.subr.bf16.mxu1 %v574_v1 }
 0x134   :  { %477 = vmatpush3.bf16.msra.mxu1 %v476_v47 }
 0x1a1   :  { %v313_v48 = vpop.permute.xlu0 %312 }
 0x1a2   :  { %461 = vmatmul.mubr.msk.f32.vlgmr.msra.gmra.mrb[2].mxu1 %vm70_vm2, %v313_v48 }
 0x202   :  { %v266_v50 = vpop.f32.mrb[0].mxu1 }
 0x203   :  { %v267_v51 = vadd.f32 %v414_v49, %v266_v50  ;;  %v451_v52 = vpop.f32.mrb[1].mxu1 }
 0x205   :  { %v271_v53 = vmul.f32 0.70710677, %v267_v51  ;;  %v270_v55 = vmul.f32 0.5, %v267_v51 }
 0x207   :  { %492 = verf.f32 %v271_v53 }
 0x211   :  { %v493_v54 = vpop.eup %492 }
 0x212   :  { %v273_v56 = vadd.f32 1.0, %v493_v54 }
 0x214   :  { %v274_v58 = vmul.f32 %v273_v56, %v270_v55 }
 0x216   :  { %v282_v59 = vmul.f32 %v416_v57, %v274_v58 }
 0x218   :  { %v284_v60 = vsel %vm283_vm5, %v282_v59, 0.0 }
 0x219   :  { %285 = vadd.xlane.f32.xlu0 %v284_v60 }
 0x275   :  { %v382_v62 = vpop.f32.mrb[2].mxu1 }
 0x276   :  { %v462_v63 = vpop.f32.mrb[3].mxu1  ;;  %v383_v10 = vadd.f32 %v419_v9, %v382_v62 }
 0x2a6   :  { %v286_v1 = vpop.xlane.xlu0 %285 }
 0x2a7   :  { %v294_v2 = vadd.f32 %v417_v0, %v286_v1 }
 0x2a9   :  { %v418_v3 = vmul.f32 -1.442695, %v294_v2 }
 0x2ab   :  { %494 = vpow2.f32 %v418_v3 }
 0x2b5   :  { %v495_v4 = vpop.eup %494 }
 0x2b6   :  { %v298_v5 = vadd.f32 1.0, %v495_v4 }
 0x2b8   :  { %496 = vrcp.f32 %v298_v5 }
 0x2c2   :  { %v497_v6 = vpop.eup %496 }
 0x2c3   :  { %391 = vperm.xlu1 %488, %v497_v6  }
 0x342   :  { %v392_v11 = vpop.permute.xlu1 %391 }
 0x343   :  { %v394_v12 = vsel %vm388_vm6, %v392_v11, %v383_v10 }
 0x344   :  { %395 = vst [vmem:[#allocation9] sm:$0x3] %v394_v12 }
 0x345   :  { %553 = shalt.err (!%p550_p6)
}
 0x346   :  { %s554_s14 = scalar_lea.hbm %s729_s9, 32 }
 0x347   :  { %p555_p7 = scmp.ne.s32.totalorder %s729_s9, %s554_s14  ;;  %p558_p8 = scmp.lt.u32.totalorder %s554_s14, %s729_s9 }
 0x349   :  { %p560_p9 = pnand %p558_p8, %p555_p7 }
 0x34b   :  { %563 = shalt.err (!%p560_p9)
}
 0x34c   :  { %405 = dma.vmem_to_hbm [thread:$0]  %s403_s11, 32, %s729_s9, [#allocation6]  }
 0x34d   :  { %568 = dma.done.wait [#allocation6], 32  }
 0x34e   :  { %569 = vsyncadd [#allocation6], 4294967264 }
 0x34f   :  { %409 = vsyncpa [#allocation5], 1 }
 0x350   :  { %410 = vsyncpa [#allocation8], 1 }
 0x351   :  { %411 = vsyncpa [#allocation6], 1 }

</bundles_post_ra>
